<compile_context>
chip_gen: v7x
topology: tpu7x:2x2x1
jax: 0.10.0
libtpu: 0.0.40
codegen_flags: <defaults>
</compile_context>

<pallas_src>
import functools

import jax
import jax.numpy as jnp
from jax import lax
from jax.experimental import pallas as pl
from jax.experimental.pallas import tpu as pltpu


_MIB = 1024 * 1024
_X_PAIR_BUDGET = 28 * _MIB   # budget for the double-buffered region-feature tile
_MAX_TILE_B = 32             # upper cap on instances per grid step
_CIN_CHUNK = 32              # channel chunk of the in-kernel accumulator


# --------------------------------------------------------------------------- #
# Tiling policy                                                                #
# --------------------------------------------------------------------------- #
def _instance_tiling(B, cin, hw, itemsize):
    """Pick (tile_b, num_grid_steps) for the instance axis.

    * grid = cdiv(B, tile_b); ragged tail handled by partial blocks (no padding)
    * tile_b is a multiple of 8 (sublane rule for the 2-D operands) or == B
    * double-buffered x tile stays inside _X_PAIR_BUDGET (v7x 64 MiB VMEM safe)
    * >= 2 grid steps whenever B > 8 so ("parallel",) splits across both
      TensorCores on v7x
    """
    if B <= 8:
        return B, 1                                     # single full-extent block
    bytes_per_row = cin * hw * itemsize
    cap = max(8, (_X_PAIR_BUDGET // (2 * bytes_per_row)) // 8 * 8)
    tile_b = min(_MAX_TILE_B, cap)
    half = -(-B // 2)                                   # ceil(B / 2)
    tile_b = min(tile_b, max(8, (half // 8) * 8))       # guarantee >= 2 steps
    tile_b = max(8, (tile_b // 8) * 8)
    return tile_b, pl.cdiv(B, tile_b)


def _vmem_limit(tile_b, cin, hw, x_itemsize, aux_tile_bytes):
    x_pair = 2 * tile_b * cin * hw * x_itemsize         # double-buffered x tile
    total = x_pair + 2 * aux_tile_bytes + 6 * _MIB      # small bufs + margin
    return int(min(56 * _MIB, max(32 * _MIB, total)))


# --------------------------------------------------------------------------- #
# In-kernel compute                                                            #
# --------------------------------------------------------------------------- #
def _gathered_logits(x_ref, wg_ref, bg_ref):
    """logits[b, hw] = sum_c w[b, c] * x[b, c, hw] + bias[b].

    f32 accumulator over Cin chunks: the (TB, chunk, HW) product temp stays
    small instead of materializing the full (TB, Cin, HW) slab.
    """
    tb, cin, hw = x_ref.shape
    w = wg_ref[...].astype(jnp.float32)                  # (TB, Cin) — tiny
    acc = jnp.zeros((tb, hw), jnp.float32)
    step = min(_CIN_CHUNK, cin)
    for c0 in range(0, cin, step):                       # static, unrolled
        c1 = min(cin, c0 + step)
        xc = x_ref[:, c0:c1, :].astype(jnp.float32)      # (TB, chunk, HW)
        acc = acc + jnp.sum(xc * w[:, c0:c1, None], axis=1)
    return acc + bg_ref[...].astype(jnp.float32)         # (TB, HW)


def _fused_mask_loss_kernel(x_ref, wg_ref, bg_ref, gtm_ref, o_ref, *, total_b):
    # x_ref:   (TB, Cin, HW) region features (any float dtype)
    # wg_ref:  (TB, Cin)     per-instance gathered 1x1-conv weight column
    # bg_ref:  (TB, 1)       per-instance gathered bias
    # gtm_ref: (TB, HW)      ground-truth masks in {0,1} (any dtype)
    # o_ref:   (TB, 1)       per-instance BCE sums (ragged-tail rows masked to 0)
    logits = _gathered_logits(x_ref, wg_ref, bg_ref)
    y = gtm_ref[...].astype(jnp.float32)
    bce = jnp.maximum(logits, 0.0) - logits * y + jnp.log1p(jnp.exp(-jnp.abs(logits)))
    per_row = jnp.sum(bce, axis=-1, keepdims=True)       # (TB, 1)
    tb = x_ref.shape[0]
    row = lax.broadcasted_iota(jnp.int32, (tb, 1), 0) + pl.program_id(0) * tb
    o_ref[...] = jnp.where(row < total_b, per_row, 0.0)  # kill ragged-tail garbage


def _fused_mask_infer_kernel(x_ref, wg_ref, bg_ref, o_ref):
    # o_ref: (TB, HW) foreground probabilities, stored in the input dtype
    logits = _gathered_logits(x_ref, wg_ref, bg_ref)
    o_ref[...] = jax.nn.sigmoid(logits).astype(o_ref.dtype)


# --------------------------------------------------------------------------- #
# Wrapper helpers                                                              #
# --------------------------------------------------------------------------- #
def _gather_predictor_params(w, b, classes, B, C):
    """Gather the 1x1-conv column / bias for each instance's class (tiny)."""
    cls_idx = jnp.zeros((B,), jnp.int32) if C == 1 else classes.astype(jnp.int32)
    wg = jnp.take(w.T, cls_idx, axis=0)                              # (B, Cin)
    bg = jnp.take(b, cls_idx, axis=0)[:, None].astype(jnp.float32)   # (B, 1)
    return wg, bg


# --------------------------------------------------------------------------- #
# Training path: fused predictor + class gather + BCE (mean reduction)         #
# --------------------------------------------------------------------------- #
def mask_rcnn_loss_fused(x, w, b, gt_classes, gt_masks):
    B, Cin, H, W = x.shape
    C = w.shape[1]
    HW = H * W
    if B == 0:
        return jnp.float32(0.0)          # detectron2: no proposals -> zero loss
    tile_b, grid = _instance_tiling(B, Cin, HW, x.dtype.itemsize)

    wg, bg = _gather_predictor_params(w, b, gt_classes, B, C)
    x_flat = x.reshape(B, Cin, HW)       # free row-major reshape
    gtm = gt_masks.reshape(B, HW)        # native dtype; cast happens in-kernel

    aux = tile_b * (Cin * wg.dtype.itemsize + 4 + HW * gtm.dtype.itemsize + 4)
    kernel = functools.partial(_fused_mask_loss_kernel, total_b=B)
    per_instance = pl.pallas_call(
        kernel,
        out_shape=jax.ShapeDtypeStruct((B, 1), jnp.float32),
        grid=(grid,),
        in_specs=[
            pl.BlockSpec((tile_b, Cin, HW), lambda i: (i, 0, 0)),
            pl.BlockSpec((tile_b, Cin), lambda i: (i, 0)),
            pl.BlockSpec((tile_b, 1), lambda i: (i, 0)),
            pl.BlockSpec((tile_b, HW), lambda i: (i, 0)),
        ],
        out_specs=pl.BlockSpec((tile_b, 1), lambda i: (i, 0)),
        compiler_params=pltpu.CompilerParams(
            dimension_semantics=("parallel",),
            vmem_limit_bytes=_vmem_limit(tile_b, Cin, HW, x.dtype.itemsize, aux)),
    )(x_flat, wg, bg, gtm)

    # reduction='mean' over all B*H*W gathered logits (tail rows already zeroed)
    return jnp.sum(per_instance[:, 0]) / jnp.float32(B * HW)
    # TODO(synk): event-storage scalars (mask accuracy / false_positive /
    #   false_negative via .item()) are host-side logging side effects; not ported.


# --------------------------------------------------------------------------- #
# Inference path: fused predictor + class gather + sigmoid                     #
# --------------------------------------------------------------------------- #
def mask_rcnn_inference_fused(x, w, b, pred_classes):
    B, Cin, H, W = x.shape
    C = w.shape[1]
    HW = H * W
    if B == 0:
        return jnp.zeros((0, 1, H, W), x.dtype)
    tile_b, grid = _instance_tiling(B, Cin, HW, x.dtype.itemsize)

    wg, bg = _gather_predictor_params(w, b, pred_classes, B, C)
    x_flat = x.reshape(B, Cin, HW)

    aux = tile_b * (Cin * wg.dtype.itemsize + 4 + HW * x.dtype.itemsize)
    probs = pl.pallas_call(
        _fused_mask_infer_kernel,
        out_shape=jax.ShapeDtypeStruct((B, HW), x.dtype),   # lane-dense, input dtype
        grid=(grid,),
        in_specs=[
            pl.BlockSpec((tile_b, Cin, HW), lambda i: (i, 0, 0)),
            pl.BlockSpec((tile_b, Cin), lambda i: (i, 0)),
            pl.BlockSpec((tile_b, 1), lambda i: (i, 0)),
        ],
        out_specs=pl.BlockSpec((tile_b, HW), lambda i: (i, 0)),
        compiler_params=pltpu.CompilerParams(
            dimension_semantics=("parallel",),
            vmem_limit_bytes=_vmem_limit(tile_b, Cin, HW, x.dtype.itemsize, aux)),
    )(x_flat, wg, bg)

    # TODO(synk): detectron2 splits pred_masks back onto per-image Instances
    #   objects (pure Python container glue); we return the (B, 1, H, W) tensor.
    return probs.reshape(B, 1, H, W)


# --------------------------------------------------------------------------- #
# BaseMaskRCNNHead.forward equivalent                                          #
# --------------------------------------------------------------------------- #
def base_mask_rcnn_head_forward(x, gt_classes, gt_masks, params, training):
    # TODO(synk): BaseMaskRCNNHead.layers() is abstract (raises NotImplementedError);
    #   a deterministic 1x1-conv predictor (Cin -> num_classes) serves as the
    #   concrete `layers`, fused here with the loss / inference epilogue so the
    #   full (B, C, H, W) logits never materialize in HBM.
    if training:
        return {"loss_mask": mask_rcnn_loss_fused(
            x, params["w"], params["b"], gt_classes, gt_masks)}
    else:
        return mask_rcnn_inference_fused(x, params["w"], params["b"], gt_classes)


# --------------------------------------------------------------------------- #
def _run_and_check(key, B, Cin, H, W, C):
    k_x, k_w, k_b, k_cls, k_msk = jax.random.split(key, 5)
    x = jax.random.normal(k_x, (B, Cin, H, W), dtype=jnp.float32)
    params = {
        "w": jax.random.normal(k_w, (Cin, C), dtype=jnp.float32) * 0.1,
        "b": jax.random.normal(k_b, (C,), dtype=jnp.float32) * 0.01,
    }
    gt_classes = jax.random.randint(k_cls, (B,), 0, C, dtype=jnp.int32)
    gt_masks = jax.random.bernoulli(k_msk, 0.5, (B, H, W)).astype(jnp.float32)

    # ---- training path ----
    out_train = base_mask_rcnn_head_forward(x, gt_classes, gt_masks, params, True)
    loss = jax.block_until_ready(out_train["loss_mask"])

    # ---- inference path ----
    pred_masks = jax.block_until_ready(
        base_mask_rcnn_head_forward(x, gt_classes, gt_masks, params, False))
    assert pred_masks.shape == (B, 1, H, W)

    # ---- plain-JAX reference check ----
    logits_ref = (jnp.einsum("bchw,cd->bdhw", x, params["w"])
                  + params["b"][None, :, None, None])
    sel = logits_ref[jnp.arange(B), gt_classes]                       # (B, H, W)
    bce_ref = jnp.mean(jnp.maximum(sel, 0.0) - sel * gt_masks
                       + jnp.log1p(jnp.exp(-jnp.abs(sel))))
    probs_ref = jax.nn.sigmoid(sel)[:, None]
    assert jnp.allclose(loss, bce_ref, rtol=1e-4, atol=1e-4), (loss, bce_ref)
    assert jnp.allclose(pred_masks, probs_ref, rtol=1e-4, atol=1e-4)


if __name__ == "__main__":
    key = jax.random.PRNGKey(0)
    k1, k2 = jax.random.split(key)
    # small single-block case (full-extent blocks, grid = 1)
    _run_and_check(k1, B=4, Cin=8, H=16, W=16, C=4)
    # multi-step grid with a ragged tail (tile_b=8, grid=3, last block partial)
    _run_and_check(k2, B=20, Cin=16, H=16, W=16, C=4)
    print("KERNEL_OK")
</pallas_src>

<mosaic_0001>
module attributes {stable_mosaic.version = 11 : i64} {
  func.func @_fused_mask_loss_kernel(%arg0: i32, %arg1: memref<4x8x256xf32, #tpu.memory_space<vmem>>, %arg2: memref<4x8xf32, #tpu.memory_space<vmem>>, %arg3: memref<4x1xf32, #tpu.memory_space<vmem>>, %arg4: memref<4x256xf32, #tpu.memory_space<vmem>>, %arg5: memref<4x1xf32, #tpu.memory_space<vmem>>) attributes {dimension_semantics = [#tpu.dimension_semantics<parallel>], iteration_bounds = array<i64: 1>, scalar_prefetch = 0 : i64, scratch_operands = 0 : i64, tpu.core_type = #tpu.core_type<tc>, window_params = [{transform_indices = @transform_0, window_bounds = array<i64: 4, 8, 256>}, {transform_indices = @transform_1, window_bounds = array<i64: 4, 8>}, {transform_indices = @transform_2, window_bounds = array<i64: 4, 1>}, {transform_indices = @transform_3, window_bounds = array<i64: 4, 256>}, {transform_indices = @transform_4, window_bounds = array<i64: 4, 1>}]} {
    %c0 = arith.constant 0 : index
    %c0_0 = arith.constant 0 : index
    %0 = vector.load %arg2[%c0, %c0_0] : memref<4x8xf32, #tpu.memory_space<vmem>>, vector<4x8xf32>
    %cst = arith.constant 0.000000e+00 : f32
    %1 = vector.broadcast %cst : f32 to vector<4x256xf32>
    %c0_1 = arith.constant 0 : index
    %c0_2 = arith.constant 0 : index
    %c0_3 = arith.constant 0 : index
    %2 = vector.load %arg1[%c0_1, %c0_2, %c0_3] : memref<4x8x256xf32, #tpu.memory_space<vmem>>, vector<4x8x256xf32>
    %3 = vector.shape_cast %0 : vector<4x8xf32> to vector<4x8x1xf32>
    %4 = vector.broadcast %3 : vector<4x8x1xf32> to vector<4x8x256xf32>
    %5 = arith.mulf %2, %4 : vector<4x8x256xf32>
    %cst_4 = arith.constant dense<0.000000e+00> : vector<4x256xf32>
    %6 = vector.multi_reduction <add>, %5, %cst_4 [1] : vector<4x8x256xf32> to vector<4x256xf32>
    %7 = arith.addf %1, %6 : vector<4x256xf32>
    %c0_5 = arith.constant 0 : index
    %c0_6 = arith.constant 0 : index
    %8 = vector.load %arg3[%c0_5, %c0_6] : memref<4x1xf32, #tpu.memory_space<vmem>>, vector<4x1xf32>
    %9 = vector.broadcast %8 : vector<4x1xf32> to vector<4x256xf32>
    %10 = arith.addf %7, %9 : vector<4x256xf32>
    %c0_7 = arith.constant 0 : index
    %c0_8 = arith.constant 0 : index
    %11 = vector.load %arg4[%c0_7, %c0_8] : memref<4x256xf32, #tpu.memory_space<vmem>>, vector<4x256xf32>
    %cst_9 = arith.constant 0.000000e+00 : f32
    %12 = vector.broadcast %cst_9 : f32 to vector<4x256xf32>
    %13 = arith.maximumf %10, %12 : vector<4x256xf32>
    %14 = arith.mulf %10, %11 : vector<4x256xf32>
    %15 = arith.subf %13, %14 : vector<4x256xf32>
    %16 = math.absf %10 : vector<4x256xf32>
    %cst_10 = arith.constant 0.000000e+00 : f32
    %17 = vector.broadcast %cst_10 : f32 to vector<4x256xf32>
    %18 = arith.subf %17, %16 : vector<4x256xf32>
    %19 = math.exp %18 : vector<4x256xf32>
    %20 = math.log1p %19 : vector<4x256xf32>
    %21 = arith.addf %15, %20 : vector<4x256xf32>
    %cst_11 = arith.constant dense<0.000000e+00> : vector<4xf32>
    %22 = vector.multi_reduction <add>, %21, %cst_11 [1] : vector<4x256xf32> to vector<4xf32>
    %23 = vector.shape_cast %22 : vector<4xf32> to vector<4x1xf32>
    %24 = tpu.iota {dimensions = array<i32: 0>} : vector<4x1xi32>
    %c4_i32 = arith.constant 4 : i32
    %25 = arith.muli %arg0, %c4_i32 : i32
    %26 = vector.broadcast %25 : i32 to vector<4x1xi32>
    %27 = arith.addi %24, %26 : vector<4x1xi32>
    %c4_i32_12 = arith.constant 4 : i32
    %28 = vector.broadcast %c4_i32_12 : i32 to vector<4x1xi32>
    %29 = arith.cmpi slt, %27, %28 : vector<4x1xi32>
    %cst_13 = arith.constant 0.000000e+00 : f32
    %30 = vector.broadcast %cst_13 : f32 to vector<4x1xf32>
    %31 = arith.select %29, %23, %30 : vector<4x1xi1>, vector<4x1xf32>
    %c0_14 = arith.constant 0 : index
    %c0_15 = arith.constant 0 : index
    %32 = vector.load %arg5[%c0_14, %c0_15] : memref<4x1xf32, #tpu.memory_space<vmem>>, vector<4x1xf32>
    tpu.vector_store %arg5[%c0_14, %c0_15], %31 {strides = array<i32>} : memref<4x1xf32, #tpu.memory_space<vmem>>, vector<4x1xf32>,
    return
  }
  func.func @transform_0(%arg0: i32) -> (i32, i32, i32) {
    %c0_i32 = arith.constant 0 : i32
    %c0_i32_0 = arith.constant 0 : i32
    %c0_i32_1 = arith.constant 0 : i32
    return %arg0, %c0_i32, %c0_i32_0 : i32, i32, i32
  }
  func.func @transform_1(%arg0: i32) -> (i32, i32) {
    %c0_i32 = arith.constant 0 : i32
    %c0_i32_0 = arith.constant 0 : i32
    return %arg0, %c0_i32 : i32, i32
  }
  func.func @transform_2(%arg0: i32) -> (i32, i32) {
    %c0_i32 = arith.constant 0 : i32
    %c0_i32_0 = arith.constant 0 : i32
    return %arg0, %c0_i32 : i32, i32
  }
  func.func @transform_3(%arg0: i32) -> (i32, i32) {
    %c0_i32 = arith.constant 0 : i32
    %c0_i32_0 = arith.constant 0 : i32
    return %arg0, %c0_i32 : i32, i32
  }
  func.func @transform_4(%arg0: i32) -> (i32, i32) {
    %c0_i32 = arith.constant 0 : i32
    %c0_i32_0 = arith.constant 0 : i32
    return %arg0, %c0_i32 : i32, i32
  }
}

</mosaic_0001>

<bundles_post_ra>
// kernel: tpu_custom_call.1
= control target key start
LH: loop header
LB: loop body
LE: loop exit
PB: predicated region body
PF: predicated region fallthrough
CT: control target
= control target key end

     0   :  { %9 = vsyncpa [#allocation3], 0  ;;  %s412_s15 = smov [#allocation2]   ;;  %s629_s0 = inlined_call_operand.hbm [shape: f32[4,8,256], index: 0, kind: input, shape index: {}]   ;;  %s630_s1 = inlined_call_operand.vmem [shape: f32[4,8], index: 1, kind: input, shape index: {}]   ;;  %s631_s2 = inlined_call_operand.vmem [shape: f32[4,1], index: 2, kind: input, shape index: {}]   ;;  %s632_s3 = inlined_call_operand.vmem [shape: f32[4,256], index: 3, kind: input, shape index: {}]   ;;  %s633_s4 = inlined_call_operand.vmem [shape: f32[4,1], index: 4, kind: output, shape index: {}]  }
   0x1   :  { %s15_s16 = sshll.u32 %s412_s15, 4  ;;  %s388_s19 = scalar_lea.hbm %s629_s0, 1024  ;;  %s16_s16 = int_to_ptr.vmem [resolvable:$true] %s15_s16 }
   0x2   :  { %p389_p0 = scmp.ne.s32.totalorder %s629_s0, %s388_s19  ;;  %p392_p1 = scmp.lt.u32.totalorder %s388_s19, %s629_s0 }
   0x4   :  { %p394_p2 = pnand %p392_p1, %p389_p0 }
   0x6   :  { %397 = shalt.err (!%p394_p2)
}
   0x7   :  { %s398_s24 = scalar_lea.vmem %s16_s16, 1024  ;;  %p403_p4 = scmp.lt.s32.totalorder %s16_s16, %s16_s16 }
   0x8   :  { %p399_p3 = scmp.ne.s32.totalorder %s16_s16, %s398_s24  ;;  %p404_p5 = scmp.lt.s32.totalorder %s398_s24, %s398_s24 }
   0xa   :  { %p405_p6 = por %p404_p5, %p403_p4 }
   0xc   :  { %p406_p7 = pnand %p405_p6, %p399_p3 }
   0xe   :  { %409 = shalt.err (!%p406_p7)
}
   0xf   :  { %s413_s25 = smov 256   ;;  %s414_s26 = smov 16  }
  0x10   :  { %21 = dma.hbm_to_vmem [thread:$0]  %s629_s0, 1024, %s16_s16, [#allocation3], %s413_s25, %s413_s25, %s414_s26  }
  0x11   :  { %410 = dma.done.wait [#allocation3], 1024  }
  0x12   :  { %411 = vsyncadd [#allocation3], 4294966272  ;;  %v40_v0 = vlaneseq  ;;  %v415_v1 = vmov 0   ;;  %v31_v7 = vld [vmem:[%s630_s1] sm:$0xf]  ;;  %v34_v13 = vld [vmem:[#allocation2 + $0x10] sm:$0xff] }
  0x13   :  { %354 = vset.pattern.permute.xlu0 %v415_v1  ;;  %v132_v12 = vld [vmem:[%s631_s2] sm:$0xf]  ;;  %v35_v14 = vld [vmem:[#allocation2 + $0x18] sm:$0xff]  ;;  %v33_v16 = vld [vmem:[#allocation2 + $0x8] sm:$0xff]  ;;  %vm314_vm2 = vcmask 1041409   ;;  %vm317_vm4 = vcmask 1042434  }
  0x14   :  { %v453_v2 = vshrl.u32 %v40_v0, 7  ;;  %v32_v15 = vld [vmem:[#allocation2] sm:$0xff]  ;;  %v37_v26 = vld [vmem:[#allocation2 + $0x28] sm:$0xff]  ;;  %v38_v27 = vld [vmem:[#allocation2 + $0x30] sm:$0xff]  ;;  %vm320_vm10 = vcmask 1043459   ;;  %vm330_vm11 = vcmask 1043456  }
  0x15   :  { %v36_v23 = vld [vmem:[#allocation2 + $0x20] sm:$0xff]  ;;  %v39_v28 = vld [vmem:[#allocation2 + $0x38] sm:$0xff]  ;;  %vm343_vm13 = vcmask 3072  }
  0x16   :  { %v49_v3 = vsub.s32 1, %v453_v2  ;;  %v42_v4 = vsub.s32 0, %v453_v2  ;;  %v56_v5 = vsub.s32 2, %v453_v2  ;;  %v63_v6 = vsub.s32 3, %v453_v2 }
  0x17   :  { %vm341_vm12 = vcmp.lt.s32.totalorder %v453_v2, 4 }
  0x18   :  { %v50_v8 = vrot.slane %v31_v7, %v49_v3  ;;  %v43_v9 = vrot.slane %v31_v7, %v42_v4  ;;  %v57_v10 = vrot.slane %v31_v7, %v56_v5  ;;  %v64_v11 = vrot.slane %v31_v7, %v63_v6 }
  0x1a   :  { %52 = vbcast.lane.b32.xlu0 %v50_v8, 256  ;;  %45 = vbcast.lane.b32.xlu1 %v43_v9, 256 }
  0x1e   :  { %59 = vbcast.lane.b32.xlu0 %v57_v10, 256  ;;  %66 = vbcast.lane.b32.xlu1 %v64_v11, 256 }
  0x22   :  { %135 = vperm.xlu0 %354, %v132_v12  }
  0x8c   :  { %v53_v17 = vpop.permute.xlu0 %52  ;;  %v46_v18 = vpop.permute.xlu1 %45 }
  0x8d   :  { %v70_v19 = vmul.f32 %v53_v17, %v34_v13  ;;  %v71_v20 = vmul.f32 %v53_v17, %v35_v14  ;;  %v68_v21 = vmul.f32 %v46_v18, %v32_v15  ;;  %v69_v22 = vmul.f32 %v46_v18, %v33_v16 }
  0x8f   :  { %v76_v24 = vrot.slane %v68_v21, 4  ;;  %v82_v25 = vrot.slane %v69_v22, 4  ;;  %v88_v31 = vrot.slane %v70_v19, 4  ;;  %v94_v32 = vrot.slane %v71_v20, 4 }
  0x90   :  { %v60_v29 = vpop.permute.xlu0 %59  ;;  %v67_v30 = vpop.permute.xlu1 %66 }
  0x91   :  { %v72_v33 = vmul.f32 %v60_v29, %v36_v23  ;;  %v73_v34 = vmul.f32 %v60_v29, %v37_v26  ;;  %v74_v35 = vmul.f32 %v67_v30, %v38_v27  ;;  %v75_v36 = vmul.f32 %v67_v30, %v39_v28 }
  0x92   :  { %v77_v37 = vadd.f32 %v76_v24, %v68_v21  ;;  %v83_v38 = vadd.f32 %v82_v25, %v69_v22  ;;  %v89_v43 = vadd.f32 %v88_v31, %v70_v19  ;;  %v95_v44 = vadd.f32 %v94_v32, %v71_v20 }
  0x93   :  { %v100_v39 = vrot.slane %v72_v33, 4  ;;  %v106_v40 = vrot.slane %v73_v34, 4  ;;  %v112_v41 = vrot.slane %v74_v35, 4  ;;  %v118_v42 = vrot.slane %v75_v36, 4 }
  0x94   :  { %v78_v48 = vrot.slane %v77_v37, 2  ;;  %v84_v49 = vrot.slane %v83_v38, 2  ;;  %v90_v51 = vrot.slane %v89_v43, 2  ;;  %v96_v52 = vrot.slane %v95_v44, 2 }
  0x95   :  { %v101_v45 = vadd.f32 %v100_v39, %v72_v33  ;;  %v107_v46 = vadd.f32 %v106_v40, %v73_v34  ;;  %v113_v47 = vadd.f32 %v112_v41, %v74_v35  ;;  %v119_v50 = vadd.f32 %v118_v42, %v75_v36 }
  0x96   :  { %v79_v56 = vadd.f32 %v78_v48, %v77_v37  ;;  %v85_v57 = vadd.f32 %v84_v49, %v83_v38  ;;  %v91_v59 = vadd.f32 %v90_v51, %v89_v43  ;;  %v97_v60 = vadd.f32 %v96_v52, %v95_v44  ;;  %v152_v51 = vld [vmem:[%s632_s3] sm:$0xff] }
  0x97   :  { %v102_v53 = vrot.slane %v101_v45, 2  ;;  %v108_v54 = vrot.slane %v107_v46, 2  ;;  %v114_v55 = vrot.slane %v113_v47, 2  ;;  %v120_v58 = vrot.slane %v119_v50, 2 }
  0x98   :  { %v80_v0 = vrot.slane %v79_v56, 1  ;;  %v86_v1 = vrot.slane %v85_v57, 1  ;;  %v92_v4 = vrot.slane %v91_v59, 1  ;;  %v98_v5 = vrot.slane %v97_v60, 1 }
  0x99   :  { %v103_v61 = vadd.f32 %v102_v53, %v101_v45  ;;  %v109_v62 = vadd.f32 %v108_v54, %v107_v46  ;;  %v115_v63 = vadd.f32 %v114_v55, %v113_v47  ;;  %v121_v3 = vadd.f32 %v120_v58, %v119_v50 }
  0x9a   :  { %v81_v13 = vadd.f32 %v80_v0, %v79_v56  ;;  %v87_v14 = vadd.f32 %v86_v1, %v85_v57  ;;  %v93_v16 = vadd.f32 %v92_v4, %v91_v59  ;;  %v99_v17 = vadd.f32 %v98_v5, %v97_v60 }
  0x9b   :  { %v104_v6 = vrot.slane %v103_v61, 1  ;;  %v110_v8 = vrot.slane %v109_v62, 1  ;;  %v116_v9 = vrot.slane %v115_v63, 1  ;;  %v122_v12 = vrot.slane %v121_v3, 1 }
  0x9c   :  { %v162_v54 = vcombine.high %v152_v51, %v152_v51  ;;  %v163_v56 = vrot.slane %v152_v51, 1  ;;  %v165_v58 = vrot.slane %v152_v51, 2  ;;  %v167_v59 = vrot.slane %v152_v51, 3 }
  0x9d   :  { %v105_v18 = vadd.f32 %v104_v6, %v103_v61  ;;  %v111_v19 = vadd.f32 %v110_v8, %v109_v62  ;;  %v117_v20 = vadd.f32 %v116_v9, %v115_v63  ;;  %v123_v26 = vadd.f32 %v122_v12, %v121_v3 }
  0x9e   :  { %v164_v57 = vrot.slane %v162_v54, 1  ;;  %v166_v61 = vrot.slane %v162_v54, 2  ;;  %v168_v62 = vrot.slane %v162_v54, 3 }
  0xa1   :  { %v136_v7 = vpop.permute.xlu0 %135 }
  0xa2   :  { %v137_v10 = vrot.slane %v136_v7, 1  ;;  %v138_v11 = vrot.slane %v136_v7, 2  ;;  %v139_v15 = vrot.slane %v136_v7, 3  ;;  %v465_v21 = vadd.f32 %v136_v7, %v81_v13 }
  0xa3   :  { %v467_v22 = vadd.f32 %v136_v7, %v87_v14 }
  0xa4   :  { %v469_v23 = vadd.f32 %v137_v10, %v93_v16  ;;  %v471_v24 = vadd.f32 %v137_v10, %v99_v17  ;;  %v473_v25 = vadd.f32 %v138_v11, %v105_v18  ;;  %v475_v27 = vadd.f32 %v138_v11, %v111_v19 }
  0xa5   :  { %v477_v28 = vadd.f32 %v139_v15, %v117_v20  ;;  %v479_v29 = vadd.f32 %v139_v15, %v123_v26  ;;  %v193_v30 = vand.u32 2147483647, %v465_v21  ;;  %v194_v31 = vand.u32 2147483647, %v467_v22 }
  0xa6   :  { %v195_v32 = vand.u32 2147483647, %v469_v23  ;;  %v196_v33 = vand.u32 2147483647, %v471_v24  ;;  %v197_v34 = vand.u32 2147483647, %v473_v25  ;;  %v177_v9 = vmul.f32 %v152_v51, %v465_v21 }
  0xa7   :  { %v198_v35 = vand.u32 2147483647, %v475_v27  ;;  %v199_v36 = vand.u32 2147483647, %v477_v28  ;;  %v201_v37 = vsub.f32 0.0, %v193_v30  ;;  %v202_v38 = vsub.f32 0.0, %v194_v31 }
  0xa8   :  { %v203_v39 = vsub.f32 0.0, %v195_v32  ;;  %v204_v40 = vsub.f32 0.0, %v196_v33  ;;  %v200_v41 = vand.u32 2147483647, %v479_v29  ;;  %v205_v42 = vsub.f32 0.0, %v197_v34 }
  0xa9   :  { %v206_v43 = vsub.f32 0.0, %v198_v35  ;;  %v209_v44 = vmul.f32 1.442695, %v201_v37  ;;  %v211_v45 = vmul.f32 1.442695, %v202_v38  ;;  %v207_v47 = vsub.f32 0.0, %v199_v36 }
  0xaa   :  { %v213_v46 = vmul.f32 1.442695, %v203_v39  ;;  %v215_v48 = vmul.f32 1.442695, %v204_v40  ;;  %v217_v49 = vmul.f32 1.442695, %v205_v42  ;;  %v178_v10 = vmul.f32 %v162_v54, %v467_v22 }
  0xab   :  { %356 = vpow2.f32 %v209_v44  ;;  %v208_v50 = vsub.f32 0.0, %v200_v41  ;;  %v219_v52 = vmul.f32 1.442695, %v206_v43  ;;  %v221_v53 = vmul.f32 1.442695, %v207_v47 }
  0xac   :  { %358 = vpow2.f32 %v211_v45  ;;  %v153_v63 = vmax.f32 %v465_v21, 0.0  ;;  %v154_v0 = vmax.f32 %v467_v22, 0.0  ;;  %v155_v3 = vmax.f32 %v469_v23, 0.0 }
  0xad   :  { %360 = vpow2.f32 %v213_v46  ;;  %v223_v55 = vmul.f32 1.442695, %v208_v50  ;;  %v156_v4 = vmax.f32 %v471_v24, 0.0  ;;  %v157_v5 = vmax.f32 %v473_v25, 0.0 }
  0xae   :  { %362 = vpow2.f32 %v215_v48  ;;  %v158_v8 = vmax.f32 %v475_v27, 0.0  ;;  %v159_v13 = vmax.f32 %v477_v28, 0.0  ;;  %v160_v14 = vmax.f32 %v479_v29, 0.0 }
  0xaf   :  { %364 = vpow2.f32 %v217_v49  ;;  %v179_v17 = vmul.f32 %v163_v56, %v469_v23  ;;  %v180_v18 = vmul.f32 %v164_v57, %v471_v24  ;;  %v181_v19 = vmul.f32 %v165_v58, %v473_v25 }
  0xb0   :  { %366 = vpow2.f32 %v219_v52  ;;  %v182_v20 = vmul.f32 %v166_v61, %v475_v27  ;;  %v183_v21 = vmul.f32 %v167_v59, %v477_v28  ;;  %v524_v30 = vmul.f32 %v168_v62, %v479_v29 }
  0xb1   :  { %368 = vpow2.f32 %v221_v53  ;;  %v526_v31 = vsub.f32 %v153_v63, %v177_v9  ;;  %v528_v23 = vsub.f32 %v154_v0, %v178_v10  ;;  %v187_v33 = vsub.f32 %v155_v3, %v179_v17 }
  0xb2   :  { %370 = vpow2.f32 %v223_v55  ;;  %v536_v34 = vsub.f32 %v156_v4, %v180_v18  ;;  %v542_v38 = vsub.f32 %v157_v5, %v181_v19  ;;  %v549_v45 = vsub.f32 %v158_v8, %v182_v20 }
  0xb3   :  { %v561_v53 = vsub.f32 %v159_v13, %v183_v21 }
  0xb5   :  { %v492_v60 = vpop.eup %356 }
  0xb6   :  { %v496_v1 = vpop.eup %358  ;;  %v225_v6 = vadd.f32 1.0, %v492_v60  ;;  %v228_v24 = vmul.f32 -0.5, %v492_v60  ;;  %v231_v27 = vand.u32 2147483647, %v492_v60 }
  0xb7   :  { %v502_v7 = vpop.eup %360  ;;  %v234_v11 = vadd.f32 1.0, %v496_v1  ;;  %v237_v28 = vmul.f32 -0.5, %v496_v1  ;;  %v240_v35 = vand.u32 2147483647, %v496_v1 }
  0xb8   :  { %v508_v12 = vpop.eup %362  ;;  %372 = vlog2.f32 %v225_v6  ;;  %v243_v15 = vadd.f32 1.0, %v502_v7  ;;  %v246_v36 = vmul.f32 -0.5, %v502_v7  ;;  %v229_v41 = vadd.f32 1.0, %v228_v24 }
  0xb9   :  { %v513_v16 = vpop.eup %364  ;;  %374 = vlog2.f32 %v234_v11  ;;  %v252_v22 = vadd.f32 1.0, %v508_v12  ;;  %v255_v39 = vmul.f32 -0.5, %v508_v12  ;;  %v249_v42 = vand.u32 2147483647, %v502_v7 }
  0xba   :  { %376 = vlog2.f32 %v243_v15  ;;  %v521_v26 = vpop.eup %366  ;;  %v261_v32 = vadd.f32 1.0, %v513_v16  ;;  %v264_v43 = vmul.f32 -0.5, %v513_v16  ;;  %vm551_vm0 = vcmp.lt.f32.partialorder %v231_v27, 0.0004427343 }
  0xbb   :  { %v531_v25 = vpop.eup %368  ;;  %378 = vlog2.f32 %v252_v22  ;;  %v270_v40 = vadd.f32 1.0, %v521_v26  ;;  %v238_v47 = vadd.f32 1.0, %v237_v28  ;;  %vm555_vm1 = vcmp.lt.f32.partialorder %v240_v35, 0.0004427343 }
  0xbc   :  { %v540_v37 = vpop.eup %370  ;;  %380 = vlog2.f32 %v261_v32  ;;  %v279_v44 = vadd.f32 1.0, %v531_v25  ;;  %v247_v49 = vadd.f32 1.0, %v246_v36  ;;  %v273_v50 = vmul.f32 -0.5, %v521_v26 }
  0xbd   :  { %382 = vlog2.f32 %v270_v40  ;;  %v288_v51 = vadd.f32 1.0, %v540_v37  ;;  %v256_v54 = vadd.f32 1.0, %v255_v39  ;;  %v258_v55 = vand.u32 2147483647, %v508_v12 }
  0xbe   :  { %384 = vlog2.f32 %v279_v44  ;;  %v267_v56 = vand.u32 2147483647, %v513_v16  ;;  %v230_v58 = vmul.f32 %v492_v60, %v229_v41  ;;  %vm566_vm3 = vcmp.lt.f32.partialorder %v249_v42, 0.0004427343 }
  0xbf   :  { %v265_v61 = vadd.f32 1.0, %v264_v43  ;;  %386 = vlog2.f32 %v288_v51  ;;  %v239_v0 = vmul.f32 %v496_v1, %v238_v47  ;;  %v276_v3 = vand.u32 2147483647, %v521_v26 }
  0xc0   :  { %v282_v4 = vmul.f32 -0.5, %v531_v25  ;;  %v248_v6 = vmul.f32 %v502_v7, %v247_v49  ;;  %v274_v8 = vadd.f32 1.0, %v273_v50  ;;  %v291_v60 = vmul.f32 -0.5, %v540_v37 }
  0xc1   :  { %v257_v11 = vmul.f32 %v508_v12, %v256_v54  ;;  %vm576_vm5 = vcmp.lt.f32.partialorder %v258_v55, 0.0004427343  ;;  %vm580_vm6 = vcmp.lt.f32.partialorder %v267_v56, 0.0004427343  ;;  %v266_v17 = vmul.f32 %v513_v16, %v265_v61 }
  0xc2   :  { %v373_v52 = vpop.eup %372  ;;  %v285_v18 = vand.u32 2147483647, %v531_v25  ;;  %vm590_vm7 = vcmp.lt.f32.partialorder %v276_v3, 0.0004427343  ;;  %v283_v21 = vadd.f32 1.0, %v282_v4  ;;  %v275_v28 = vmul.f32 %v521_v26, %v274_v8 }
  0xc3   :  { %v375_v57 = vpop.eup %374  ;;  %v227_v63 = vmul.f32 0.6931472, %v373_v52  ;;  %v292_v32 = vadd.f32 1.0, %v291_v60  ;;  %v294_v36 = vand.u32 2147483647, %v540_v37 }
  0xc4   :  { %v377_v62 = vpop.eup %376  ;;  %v236_v10 = vmul.f32 0.6931472, %v375_v57  ;;  %vm603_vm8 = vcmp.lt.f32.partialorder %v285_v18, 0.0004427343  ;;  %v284_v46 = vmul.f32 %v531_v25, %v283_v21 }
  0xc5   :  { %v245_v5 = vmul.f32 0.6931472, %v377_v62  ;;  %v379_v9 = vpop.eup %378  ;;  %v233_v12 = vsel %vm551_vm0, %v230_v58, %v227_v63  ;;  %v293_v50 = vmul.f32 %v540_v37, %v292_v32  ;;  %vm295_vm9 = vcmp.lt.f32.partialorder %v294_v36, 0.0004427343 }
  0xc6   :  { %v254_v7 = vmul.f32 0.6931472, %v379_v9  ;;  %v381_v19 = vpop.eup %380  ;;  %v242_v35 = vsel %vm555_vm1, %v239_v0, %v236_v10  ;;  %v297_v26 = vadd.f32 %v233_v12, %v526_v31 }
  0xc7   :  { %v251_v15 = vsel %vm566_vm3, %v248_v6, %v245_v5  ;;  %v263_v27 = vmul.f32 0.6931472, %v381_v19  ;;  %v383_v16 = vpop.eup %382  ;;  %v298_v51 = vadd.f32 %v242_v35, %v528_v23 }
  0xc8   :  { %v299_v22 = vadd.f32 %v251_v15, %v187_v33  ;;  %v260_v24 = vsel %vm576_vm5, %v257_v11, %v254_v7  ;;  %v385_v41 = vpop.eup %384  ;;  %v272_v42 = vmul.f32 0.6931472, %v383_v16 }
  0xc9   :  { %v300_v39 = vadd.f32 %v260_v24, %v536_v34  ;;  %v269_v33 = vsel %vm580_vm6, %v266_v17, %v263_v27  ;;  %v281_v44 = vmul.f32 0.6931472, %v385_v41  ;;  %v387_v49 = vpop.eup %386 }
  0xca   :  { %v313_v40 = vrot.slane %v299_v22, 7  ;;  %v301_v47 = vadd.f32 %v269_v33, %v542_v38  ;;  %v278_v34 = vsel %vm590_vm7, %v275_v28, %v272_v42  ;;  %v290_v31 = vmul.f32 0.6931472, %v387_v49 }
  0xcb   :  { %v322_v48 = vrot.slane %v300_v39, 7  ;;  %v287_v54 = vsel %vm603_vm8, %v284_v46, %v281_v44  ;;  %v302_v55 = vadd.f32 %v278_v34, %v549_v45  ;;  %v192_v38 = vsub.f32 %v160_v14, %v524_v30 }
  0xcc   :  { %v315_v52 = vsel %vm314_vm2, %v313_v40, %v297_v26  ;;  %v316_v25 = vrot.slane %v301_v47, 6  ;;  %v303_v56 = vadd.f32 %v287_v54, %v561_v53  ;;  %v296_v57 = vsel %vm295_vm9, %v293_v50, %v290_v31 }
  0xcd   :  { %v323_v37 = vsel %vm314_vm2, %v322_v48, %v298_v51  ;;  %v324_v58 = vrot.slane %v302_v55, 6  ;;  %v304_v59 = vadd.f32 %v296_v57, %v192_v38 }
  0xce   :  { %v318_v23 = vsel %vm317_vm4, %v316_v25, %v315_v52  ;;  %v319_v61 = vrot.slane %v303_v56, 5 }
  0xcf   :  { %v325_v45 = vsel %vm317_vm4, %v324_v58, %v323_v37  ;;  %v326_v63 = vrot.slane %v304_v59, 5 }
  0xd0   :  { %v321_v62 = vsel %vm320_vm10, %v319_v61, %v318_v23 }
  0xd1   :  { %v331_v0 = vsel %vm330_vm11, %v321_v62, 0.0  ;;  %v327_v29 = vsel %vm320_vm10, %v326_v63, %v325_v45 }
  0xd2   :  { %v332_v14 = vsel %vm330_vm11, %v327_v29, 0.0 }
  0xd3   :  { %v333_v30 = vadd.f32 %v332_v14, %v331_v0 }
  0xd5   :  { %334 = vadd.xlane.f32.xlu1 %v333_v30 }
 0x162   :  { %v335_v53 = vpop.xlane.xlu1 %334 }
 0x163   :  { %v342_v3 = vsel %vm341_vm12, %v335_v53, 0.0 }
 0x164   :  { %344 = vst.msk [vmem:[%s633_s4] sm:$0xf] %vm343_vm13, %v342_v3 }
 0x165   :  { %349 = vsyncpa [#allocation3], 1 }

</bundles_post_ra>
